<compile_context>
chip_gen: v7x
topology: tpu7x:2x2x1
jax: 0.10.0
libtpu: 0.0.40
codegen_flags: <defaults>
</compile_context>

<pallas_src>
import math

import jax
import jax.numpy as jnp
from jax.experimental import pallas as pl
from jax.experimental.pallas import tpu as pltpu


def lstm_encoder_kernel(x_ref,            # (L*B, E)  seq-major flattened input
                        h0_ref, c0_ref,   # (B, H) initial hidden / cell state
                        w_ref,            # (E+H, 4H) packed [W_ih^T ; W_hh^T]
                        b_ref,            # (1, 4H)   b_ih + b_hh
                        out_ref,          # (L, B, H) encoder outputs
                        hn_ref, cn_ref):  # (B, H)    final h / c
    L, B, H = out_ref.shape
    E = x_ref.shape[1]

    # Static slices of the packed weight slab (E and E+H are sublane-aligned).
    wih = w_ref[0:E, :]               # (E, 4H)
    whh = w_ref[E:E + H, :]           # (H, 4H)
    bias = b_ref[...]                 # (1, 4H)

    # ---- hoisted input projection: one big MXU matmul, bias added once ----
    gx = jnp.dot(x_ref[...], wih, preferred_element_type=jnp.float32) + bias  # (L*B, 4H)

    h = h0_ref[...].astype(jnp.float32)
    c = c0_ref[...].astype(jnp.float32)

    # ---- serial recurrence, fully unrolled (L small & static) -------------
    # PyTorch LSTM gate order: i, f, g, o.
    for t in range(L):
        gates = gx[t * B:(t + 1) * B, :] + jnp.dot(
            h, whh, preferred_element_type=jnp.float32)          # (B, 4H)
        i_g = jax.nn.sigmoid(gates[:, 0 * H:1 * H])
        f_g = jax.nn.sigmoid(gates[:, 1 * H:2 * H])
        g_g = jnp.tanh(gates[:, 2 * H:3 * H])
        o_g = jax.nn.sigmoid(gates[:, 3 * H:4 * H])
        c = f_g * c + i_g * g_g
        h = o_g * jnp.tanh(c)
        out_ref[t] = h.astype(out_ref.dtype)

    hn_ref[...] = h.astype(hn_ref.dtype)
    cn_ref[...] = c.astype(cn_ref.dtype)


def encoder_forward(x, h0, c0, params):
    """Pallas equivalent of Encoder.forward(x, (h0, c0)).

    x : (L, B, E) float32, h0/c0 : (B, H) float32.
    Returns (output (L,B,H), (h_n (1,B,H), c_n (1,B,H))).
    """
    L, B, E = x.shape
    H = params["whh"].shape[0]

    # Pack parameters -> fewer, larger HBM->VMEM DMAs (kernel is latency-bound).
    w_packed = jnp.concatenate([params["wih"], params["whh"]], axis=0)  # (E+H, 4H)
    bias = params["bih"] + params["bhh"]                                # (1, 4H)
    x2d = x.reshape(L * B, E)   # done by XLA outside the kernel (no in-kernel relayout)

    vmem = pl.BlockSpec(memory_space=pltpu.MemorySpace.VMEM)
    out, hn, cn = pl.pallas_call(
        lstm_encoder_kernel,
        out_shape=(jax.ShapeDtypeStruct((L, B, H), jnp.float32),
                   jax.ShapeDtypeStruct((B, H), jnp.float32),
                   jax.ShapeDtypeStruct((B, H), jnp.float32)),
        in_specs=[vmem] * 5,
        out_specs=(vmem, vmem, vmem),
    )(x2d, h0, c0, w_packed, bias)

    # Match PyTorch nn.LSTM return convention (num_layers=1 leading dim).
    return out, (hn[None], cn[None])


encoder_forward = jax.jit(encoder_forward)


# ------------------------- pure-JAX reference (for checking) -------------------
def reference_forward(x, h0, c0, p):
    L, B, E = x.shape
    H = p["whh"].shape[0]
    h, c = h0, c0
    outs = []
    for t in range(L):
        gates = x[t] @ p["wih"] + h @ p["whh"] + p["bih"] + p["bhh"]
        i_g = jax.nn.sigmoid(gates[:, 0 * H:1 * H])
        f_g = jax.nn.sigmoid(gates[:, 1 * H:2 * H])
        g_g = jnp.tanh(gates[:, 2 * H:3 * H])
        o_g = jax.nn.sigmoid(gates[:, 3 * H:4 * H])
        c = f_g * c + i_g * g_g
        h = o_g * jnp.tanh(c)
        outs.append(h)
    return jnp.stack(outs, axis=0), (h[None], c[None])


def init_params(key, input_dim, hidden_dim):
    """PyTorch nn.LSTM-style init; weights stored transposed (x @ W^T)."""
    E, H = input_dim, hidden_dim
    ks = jax.random.split(key, 4)
    s = 1.0 / math.sqrt(H)

    def u(k, shape):
        return jax.random.uniform(k, shape, jnp.float32, -s, s)

    return dict(
        wih=u(ks[0], (E, 4 * H)),     # weight_ih_l0^T
        whh=u(ks[1], (H, 4 * H)),     # weight_hh_l0^T
        bih=u(ks[2], (1, 4 * H)),
        bhh=u(ks[3], (1, 4 * H)),
    )


if __name__ == "__main__":
    EMBED, HIDDEN = 16, 32
    SOURCE_L, BATCH = 8, 4

    key = jax.random.PRNGKey(0)
    k_x, k_h, k_c, k_p = jax.random.split(key, 4)
    x = jax.random.normal(k_x, (SOURCE_L, BATCH, EMBED), jnp.float32)
    # Encoder.enc_init_state is zeros(H); forward() accepts any hidden, so use
    # small non-zero states to exercise the h0/c0 path.
    h0 = 0.1 * jax.random.normal(k_h, (BATCH, HIDDEN), jnp.float32)
    c0 = 0.1 * jax.random.normal(k_c, (BATCH, HIDDEN), jnp.float32)
    params = init_params(k_p, EMBED, HIDDEN)

    out, (hn, cn) = encoder_forward(x, h0, c0, params)
    out = jax.block_until_ready(out)

    ref_out, (ref_hn, ref_cn) = reference_forward(x, h0, c0, params)
    assert out.shape == (SOURCE_L, BATCH, HIDDEN)
    assert hn.shape == (1, BATCH, HIDDEN) and cn.shape == (1, BATCH, HIDDEN)
    assert jnp.allclose(out, ref_out, atol=2e-3, rtol=2e-3), (out, ref_out)
    assert jnp.allclose(hn, ref_hn, atol=2e-3, rtol=2e-3)
    assert jnp.allclose(cn, ref_cn, atol=2e-3, rtol=2e-3)
    print("KERNEL_OK")
</pallas_src>

<mosaic_0001>
module attributes {stable_mosaic.version = 11 : i64} {
  func.func @lstm_encoder_kernel(%arg0: memref<32x16xf32, #tpu.memory_space<vmem>>, %arg1: memref<4x32xf32, #tpu.memory_space<vmem>>, %arg2: memref<4x32xf32, #tpu.memory_space<vmem>>, %arg3: memref<48x128xf32, #tpu.memory_space<vmem>>, %arg4: memref<1x128xf32, #tpu.memory_space<vmem>>, %arg5: memref<8x4x32xf32, #tpu.memory_space<vmem>>, %arg6: memref<4x32xf32, #tpu.memory_space<vmem>>, %arg7: memref<4x32xf32, #tpu.memory_space<vmem>>) attributes {dimension_semantics = [], scalar_prefetch = 0 : i64, scratch_operands = 0 : i64, tpu.core_type = #tpu.core_type<tc>} {
    %c0 = arith.constant 0 : index
    %c0_0 = arith.constant 0 : index
    %0 = vector.load %arg3[%c0, %c0_0] : memref<48x128xf32, #tpu.memory_space<vmem>>, vector<16x128xf32>
    %c16 = arith.constant 16 : index
    %c0_1 = arith.constant 0 : index
    %1 = vector.load %arg3[%c16, %c0_1] : memref<48x128xf32, #tpu.memory_space<vmem>>, vector<32x128xf32>
    %c0_2 = arith.constant 0 : index
    %c0_3 = arith.constant 0 : index
    %2 = vector.load %arg4[%c0_2, %c0_3] : memref<1x128xf32, #tpu.memory_space<vmem>>, vector<1x128xf32>
    %c0_4 = arith.constant 0 : index
    %c0_5 = arith.constant 0 : index
    %3 = vector.load %arg0[%c0_4, %c0_5] : memref<32x16xf32, #tpu.memory_space<vmem>>, vector<32x16xf32>
    %cst = arith.constant dense<0.000000e+00> : vector<32x128xf32>
    %4 = tpu.matmul %3, %0, %cst {dimension_numbers = #tpu.dot_dimension_numbers<[1], [0], [0], [1], [0, 0, 1, 1], [], []>} : vector<32x16xf32>, vector<16x128xf32>, vector<32x128xf32> -> vector<32x128xf32>
    %5 = vector.broadcast %2 : vector<1x128xf32> to vector<32x128xf32>
    %6 = arith.addf %4, %5 : vector<32x128xf32>
    %c0_6 = arith.constant 0 : index
    %c0_7 = arith.constant 0 : index
    %7 = vector.load %arg1[%c0_6, %c0_7] : memref<4x32xf32, #tpu.memory_space<vmem>>, vector<4x32xf32>
    %c0_8 = arith.constant 0 : index
    %c0_9 = arith.constant 0 : index
    %8 = vector.load %arg2[%c0_8, %c0_9] : memref<4x32xf32, #tpu.memory_space<vmem>>, vector<4x32xf32>
    %9 = vector.extract_strided_slice %6 {offsets = [0, 0], sizes = [4, 128], strides = [1, 1]} : vector<32x128xf32> to vector<4x128xf32>
    %cst_10 = arith.constant dense<0.000000e+00> : vector<4x128xf32>
    %10 = tpu.matmul %7, %1, %cst_10 {dimension_numbers = #tpu.dot_dimension_numbers<[1], [0], [0], [1], [0, 0, 1, 1], [], []>} : vector<4x32xf32>, vector<32x128xf32>, vector<4x128xf32> -> vector<4x128xf32>
    %11 = arith.addf %9, %10 : vector<4x128xf32>
    %12 = vector.extract_strided_slice %11 {offsets = [0, 0], sizes = [4, 32], strides = [1, 1]} : vector<4x128xf32> to vector<4x32xf32>
    %13 = arith.negf %12 : vector<4x32xf32>
    %14 = math.exp %13 : vector<4x32xf32>
    %cst_11 = arith.constant 1.000000e+00 : f32
    %15 = vector.broadcast %cst_11 : f32 to vector<4x32xf32>
    %16 = arith.addf %15, %14 : vector<4x32xf32>
    %17 = arith.divf %15, %16 : vector<4x32xf32>
    %18 = vector.extract_strided_slice %11 {offsets = [0, 32], sizes = [4, 32], strides = [1, 1]} : vector<4x128xf32> to vector<4x32xf32>
    %19 = arith.negf %18 : vector<4x32xf32>
    %20 = math.exp %19 : vector<4x32xf32>
    %cst_12 = arith.constant 1.000000e+00 : f32
    %21 = vector.broadcast %cst_12 : f32 to vector<4x32xf32>
    %22 = arith.addf %21, %20 : vector<4x32xf32>
    %23 = arith.divf %21, %22 : vector<4x32xf32>
    %24 = vector.extract_strided_slice %11 {offsets = [0, 64], sizes = [4, 32], strides = [1, 1]} : vector<4x128xf32> to vector<4x32xf32>
    %25 = math.tanh %24 : vector<4x32xf32>
    %26 = vector.extract_strided_slice %11 {offsets = [0, 96], sizes = [4, 32], strides = [1, 1]} : vector<4x128xf32> to vector<4x32xf32>
    %27 = arith.negf %26 : vector<4x32xf32>
    %28 = math.exp %27 : vector<4x32xf32>
    %cst_13 = arith.constant 1.000000e+00 : f32
    %29 = vector.broadcast %cst_13 : f32 to vector<4x32xf32>
    %30 = arith.addf %29, %28 : vector<4x32xf32>
    %31 = arith.divf %29, %30 : vector<4x32xf32>
    %32 = arith.mulf %23, %8 : vector<4x32xf32>
    %33 = arith.mulf %17, %25 : vector<4x32xf32>
    %34 = arith.addf %32, %33 : vector<4x32xf32>
    %35 = math.tanh %34 : vector<4x32xf32>
    %36 = arith.mulf %31, %35 : vector<4x32xf32>
    %c0_14 = arith.constant 0 : index
    %c0_15 = arith.constant 0 : index
    %c0_16 = arith.constant 0 : index
    %37 = vector.load %arg5[%c0_14, %c0_15, %c0_16] : memref<8x4x32xf32, #tpu.memory_space<vmem>>, vector<1x4x32xf32>
    %38 = vector.shape_cast %37 : vector<1x4x32xf32> to vector<4x32xf32>
    %39 = vector.shape_cast %36 : vector<4x32xf32> to vector<1x4x32xf32>
    tpu.vector_store %arg5[%c0_14, %c0_15, %c0_16], %39 {strides = array<i32>} : memref<8x4x32xf32, #tpu.memory_space<vmem>>, vector<1x4x32xf32>,
    %40 = vector.extract_strided_slice %6 {offsets = [4, 0], sizes = [4, 128], strides = [1, 1]} : vector<32x128xf32> to vector<4x128xf32>
    %cst_17 = arith.constant dense<0.000000e+00> : vector<4x128xf32>
    %41 = tpu.matmul %36, %1, %cst_17 {dimension_numbers = #tpu.dot_dimension_numbers<[1], [0], [0], [1], [0, 0, 1, 1], [], []>} : vector<4x32xf32>, vector<32x128xf32>, vector<4x128xf32> -> vector<4x128xf32>
    %42 = arith.addf %40, %41 : vector<4x128xf32>
    %43 = vector.extract_strided_slice %42 {offsets = [0, 0], sizes = [4, 32], strides = [1, 1]} : vector<4x128xf32> to vector<4x32xf32>
    %44 = arith.negf %43 : vector<4x32xf32>
    %45 = math.exp %44 : vector<4x32xf32>
    %cst_18 = arith.constant 1.000000e+00 : f32
    %46 = vector.broadcast %cst_18 : f32 to vector<4x32xf32>
    %47 = arith.addf %46, %45 : vector<4x32xf32>
    %48 = arith.divf %46, %47 : vector<4x32xf32>
    %49 = vector.extract_strided_slice %42 {offsets = [0, 32], sizes = [4, 32], strides = [1, 1]} : vector<4x128xf32> to vector<4x32xf32>
    %50 = arith.negf %49 : vector<4x32xf32>
    %51 = math.exp %50 : vector<4x32xf32>
    %cst_19 = arith.constant 1.000000e+00 : f32
    %52 = vector.broadcast %cst_19 : f32 to vector<4x32xf32>
    %53 = arith.addf %52, %51 : vector<4x32xf32>
    %54 = arith.divf %52, %53 : vector<4x32xf32>
    %55 = vector.extract_strided_slice %42 {offsets = [0, 64], sizes = [4, 32], strides = [1, 1]} : vector<4x128xf32> to vector<4x32xf32>
    %56 = math.tanh %55 : vector<4x32xf32>
    %57 = vector.extract_strided_slice %42 {offsets = [0, 96], sizes = [4, 32], strides = [1, 1]} : vector<4x128xf32> to vector<4x32xf32>
    %58 = arith.negf %57 : vector<4x32xf32>
    %59 = math.exp %58 : vector<4x32xf32>
    %cst_20 = arith.constant 1.000000e+00 : f32
    %60 = vector.broadcast %cst_20 : f32 to vector<4x32xf32>
    %61 = arith.addf %60, %59 : vector<4x32xf32>
    %62 = arith.divf %60, %61 : vector<4x32xf32>
    %63 = arith.mulf %54, %34 : vector<4x32xf32>
    %64 = arith.mulf %48, %56 : vector<4x32xf32>
    %65 = arith.addf %63, %64 : vector<4x32xf32>
    %66 = math.tanh %65 : vector<4x32xf32>
    %67 = arith.mulf %62, %66 : vector<4x32xf32>
    %c1 = arith.constant 1 : index
    %c0_21 = arith.constant 0 : index
    %c0_22 = arith.constant 0 : index
    %68 = vector.load %arg5[%c1, %c0_21, %c0_22] : memref<8x4x32xf32, #tpu.memory_space<vmem>>, vector<1x4x32xf32>
    %69 = vector.shape_cast %68 : vector<1x4x32xf32> to vector<4x32xf32>
    %70 = vector.shape_cast %67 : vector<4x32xf32> to vector<1x4x32xf32>
    tpu.vector_store %arg5[%c1, %c0_21, %c0_22], %70 {strides = array<i32>} : memref<8x4x32xf32, #tpu.memory_space<vmem>>, vector<1x4x32xf32>,
    %71 = vector.extract_strided_slice %6 {offsets = [8, 0], sizes = [4, 128], strides = [1, 1]} : vector<32x128xf32> to vector<4x128xf32>
    %cst_23 = arith.constant dense<0.000000e+00> : vector<4x128xf32>
    %72 = tpu.matmul %67, %1, %cst_23 {dimension_numbers = #tpu.dot_dimension_numbers<[1], [0], [0], [1], [0, 0, 1, 1], [], []>} : vector<4x32xf32>, vector<32x128xf32>, vector<4x128xf32> -> vector<4x128xf32>
    %73 = arith.addf %71, %72 : vector<4x128xf32>
    %74 = vector.extract_strided_slice %73 {offsets = [0, 0], sizes = [4, 32], strides = [1, 1]} : vector<4x128xf32> to vector<4x32xf32>
    %75 = arith.negf %74 : vector<4x32xf32>
    %76 = math.exp %75 : vector<4x32xf32>
    %cst_24 = arith.constant 1.000000e+00 : f32
    %77 = vector.broadcast %cst_24 : f32 to vector<4x32xf32>
    %78 = arith.addf %77, %76 : vector<4x32xf32>
    %79 = arith.divf %77, %78 : vector<4x32xf32>
    %80 = vector.extract_strided_slice %73 {offsets = [0, 32], sizes = [4, 32], strides = [1, 1]} : vector<4x128xf32> to vector<4x32xf32>
    %81 = arith.negf %80 : vector<4x32xf32>
    %82 = math.exp %81 : vector<4x32xf32>
    %cst_25 = arith.constant 1.000000e+00 : f32
    %83 = vector.broadcast %cst_25 : f32 to vector<4x32xf32>
    %84 = arith.addf %83, %82 : vector<4x32xf32>
    %85 = arith.divf %83, %84 : vector<4x32xf32>
    %86 = vector.extract_strided_slice %73 {offsets = [0, 64], sizes = [4, 32], strides = [1, 1]} : vector<4x128xf32> to vector<4x32xf32>
    %87 = math.tanh %86 : vector<4x32xf32>
    %88 = vector.extract_strided_slice %73 {offsets = [0, 96], sizes = [4, 32], strides = [1, 1]} : vector<4x128xf32> to vector<4x32xf32>
    %89 = arith.negf %88 : vector<4x32xf32>
    %90 = math.exp %89 : vector<4x32xf32>
    %cst_26 = arith.constant 1.000000e+00 : f32
    %91 = vector.broadcast %cst_26 : f32 to vector<4x32xf32>
    %92 = arith.addf %91, %90 : vector<4x32xf32>
    %93 = arith.divf %91, %92 : vector<4x32xf32>
    %94 = arith.mulf %85, %65 : vector<4x32xf32>
    %95 = arith.mulf %79, %87 : vector<4x32xf32>
    %96 = arith.addf %94, %95 : vector<4x32xf32>
    %97 = math.tanh %96 : vector<4x32xf32>
    %98 = arith.mulf %93, %97 : vector<4x32xf32>
    %c2 = arith.constant 2 : index
    %c0_27 = arith.constant 0 : index
    %c0_28 = arith.constant 0 : index
    %99 = vector.load %arg5[%c2, %c0_27, %c0_28] : memref<8x4x32xf32, #tpu.memory_space<vmem>>, vector<1x4x32xf32>
    %100 = vector.shape_cast %99 : vector<1x4x32xf32> to vector<4x32xf32>
    %101 = vector.shape_cast %98 : vector<4x32xf32> to vector<1x4x32xf32>
    tpu.vector_store %arg5[%c2, %c0_27, %c0_28], %101 {strides = array<i32>} : memref<8x4x32xf32, #tpu.memory_space<vmem>>, vector<1x4x32xf32>,
    %102 = vector.extract_strided_slice %6 {offsets = [12, 0], sizes = [4, 128], strides = [1, 1]} : vector<32x128xf32> to vector<4x128xf32>
    %cst_29 = arith.constant dense<0.000000e+00> : vector<4x128xf32>
    %103 = tpu.matmul %98, %1, %cst_29 {dimension_numbers = #tpu.dot_dimension_numbers<[1], [0], [0], [1], [0, 0, 1, 1], [], []>} : vector<4x32xf32>, vector<32x128xf32>, vector<4x128xf32> -> vector<4x128xf32>
    %104 = arith.addf %102, %103 : vector<4x128xf32>
    %105 = vector.extract_strided_slice %104 {offsets = [0, 0], sizes = [4, 32], strides = [1, 1]} : vector<4x128xf32> to vector<4x32xf32>
    %106 = arith.negf %105 : vector<4x32xf32>
    %107 = math.exp %106 : vector<4x32xf32>
    %cst_30 = arith.constant 1.000000e+00 : f32
    %108 = vector.broadcast %cst_30 : f32 to vector<4x32xf32>
    %109 = arith.addf %108, %107 : vector<4x32xf32>
    %110 = arith.divf %108, %109 : vector<4x32xf32>
    %111 = vector.extract_strided_slice %104 {offsets = [0, 32], sizes = [4, 32], strides = [1, 1]} : vector<4x128xf32> to vector<4x32xf32>
    %112 = arith.negf %111 : vector<4x32xf32>
    %113 = math.exp %112 : vector<4x32xf32>
    %cst_31 = arith.constant 1.000000e+00 : f32
    %114 = vector.broadcast %cst_31 : f32 to vector<4x32xf32>
    %115 = arith.addf %114, %113 : vector<4x32xf32>
    %116 = arith.divf %114, %115 : vector<4x32xf32>
    %117 = vector.extract_strided_slice %104 {offsets = [0, 64], sizes = [4, 32], strides = [1, 1]} : vector<4x128xf32> to vector<4x32xf32>
    %118 = math.tanh %117 : vector<4x32xf32>
    %119 = vector.extract_strided_slice %104 {offsets = [0, 96], sizes = [4, 32], strides = [1, 1]} : vector<4x128xf32> to vector<4x32xf32>
    %120 = arith.negf %119 : vector<4x32xf32>
    %121 = math.exp %120 : vector<4x32xf32>
    %cst_32 = arith.constant 1.000000e+00 : f32
    %122 = vector.broadcast %cst_32 : f32 to vector<4x32xf32>
    %123 = arith.addf %122, %121 : vector<4x32xf32>
    %124 = arith.divf %122, %123 : vector<4x32xf32>
    %125 = arith.mulf %116, %96 : vector<4x32xf32>
    %126 = arith.mulf %110, %118 : vector<4x32xf32>
    %127 = arith.addf %125, %126 : vector<4x32xf32>
    %128 = math.tanh %127 : vector<4x32xf32>
    %129 = arith.mulf %124, %128 : vector<4x32xf32>
    %c3 = arith.constant 3 : index
    %c0_33 = arith.constant 0 : index
    %c0_34 = arith.constant 0 : index
    %130 = vector.load %arg5[%c3, %c0_33, %c0_34] : memref<8x4x32xf32, #tpu.memory_space<vmem>>, vector<1x4x32xf32>
    %131 = vector.shape_cast %130 : vector<1x4x32xf32> to vector<4x32xf32>
    %132 = vector.shape_cast %129 : vector<4x32xf32> to vector<1x4x32xf32>
    tpu.vector_store %arg5[%c3, %c0_33, %c0_34], %132 {strides = array<i32>} : memref<8x4x32xf32, #tpu.memory_space<vmem>>, vector<1x4x32xf32>,
    %133 = vector.extract_strided_slice %6 {offsets = [16, 0], sizes = [4, 128], strides = [1, 1]} : vector<32x128xf32> to vector<4x128xf32>
    %cst_35 = arith.constant dense<0.000000e+00> : vector<4x128xf32>
    %134 = tpu.matmul %129, %1, %cst_35 {dimension_numbers = #tpu.dot_dimension_numbers<[1], [0], [0], [1], [0, 0, 1, 1], [], []>} : vector<4x32xf32>, vector<32x128xf32>, vector<4x128xf32> -> vector<4x128xf32>
    %135 = arith.addf %133, %134 : vector<4x128xf32>
    %136 = vector.extract_strided_slice %135 {offsets = [0, 0], sizes = [4, 32], strides = [1, 1]} : vector<4x128xf32> to vector<4x32xf32>
    %137 = arith.negf %136 : vector<4x32xf32>
    %138 = math.exp %137 : vector<4x32xf32>
    %cst_36 = arith.constant 1.000000e+00 : f32
    %139 = vector.broadcast %cst_36 : f32 to vector<4x32xf32>
    %140 = arith.addf %139, %138 : vector<4x32xf32>
    %141 = arith.divf %139, %140 : vector<4x32xf32>
    %142 = vector.extract_strided_slice %135 {offsets = [0, 32], sizes = [4, 32], strides = [1, 1]} : vector<4x128xf32> to vector<4x32xf32>
    %143 = arith.negf %142 : vector<4x32xf32>
    %144 = math.exp %143 : vector<4x32xf32>
    %cst_37 = arith.constant 1.000000e+00 : f32
    %145 = vector.broadcast %cst_37 : f32 to vector<4x32xf32>
    %146 = arith.addf %145, %144 : vector<4x32xf32>
    %147 = arith.divf %145, %146 : vector<4x32xf32>
    %148 = vector.extract_strided_slice %135 {offsets = [0, 64], sizes = [4, 32], strides = [1, 1]} : vector<4x128xf32> to vector<4x32xf32>
    %149 = math.tanh %148 : vector<4x32xf32>
    %150 = vector.extract_strided_slice %135 {offsets = [0, 96], sizes = [4, 32], strides = [1, 1]} : vector<4x128xf32> to vector<4x32xf32>
    %151 = arith.negf %150 : vector<4x32xf32>
    %152 = math.exp %151 : vector<4x32xf32>
    %cst_38 = arith.constant 1.000000e+00 : f32
    %153 = vector.broadcast %cst_38 : f32 to vector<4x32xf32>
    %154 = arith.addf %153, %152 : vector<4x32xf32>
    %155 = arith.divf %153, %154 : vector<4x32xf32>
    %156 = arith.mulf %147, %127 : vector<4x32xf32>
    %157 = arith.mulf %141, %149 : vector<4x32xf32>
    %158 = arith.addf %156, %157 : vector<4x32xf32>
    %159 = math.tanh %158 : vector<4x32xf32>
    %160 = arith.mulf %155, %159 : vector<4x32xf32>
    %c4 = arith.constant 4 : index
    %c0_39 = arith.constant 0 : index
    %c0_40 = arith.constant 0 : index
    %161 = vector.load %arg5[%c4, %c0_39, %c0_40] : memref<8x4x32xf32, #tpu.memory_space<vmem>>, vector<1x4x32xf32>
    %162 = vector.shape_cast %161 : vector<1x4x32xf32> to vector<4x32xf32>
    %163 = vector.shape_cast %160 : vector<4x32xf32> to vector<1x4x32xf32>
    tpu.vector_store %arg5[%c4, %c0_39, %c0_40], %163 {strides = array<i32>} : memref<8x4x32xf32, #tpu.memory_space<vmem>>, vector<1x4x32xf32>,
    %164 = vector.extract_strided_slice %6 {offsets = [20, 0], sizes = [4, 128], strides = [1, 1]} : vector<32x128xf32> to vector<4x128xf32>
    %cst_41 = arith.constant dense<0.000000e+00> : vector<4x128xf32>
    %165 = tpu.matmul %160, %1, %cst_41 {dimension_numbers = #tpu.dot_dimension_numbers<[1], [0], [0], [1], [0, 0, 1, 1], [], []>} : vector<4x32xf32>, vector<32x128xf32>, vector<4x128xf32> -> vector<4x128xf32>
    %166 = arith.addf %164, %165 : vector<4x128xf32>
    %167 = vector.extract_strided_slice %166 {offsets = [0, 0], sizes = [4, 32], strides = [1, 1]} : vector<4x128xf32> to vector<4x32xf32>
    %168 = arith.negf %167 : vector<4x32xf32>
    %169 = math.exp %168 : vector<4x32xf32>
    %cst_42 = arith.constant 1.000000e+00 : f32
    %170 = vector.broadcast %cst_42 : f32 to vector<4x32xf32>
    %171 = arith.addf %170, %169 : vector<4x32xf32>
    %172 = arith.divf %170, %171 : vector<4x32xf32>
    %173 = vector.extract_strided_slice %166 {offsets = [0, 32], sizes = [4, 32], strides = [1, 1]} : vector<4x128xf32> to vector<4x32xf32>
    %174 = arith.negf %173 : vector<4x32xf32>
    %175 = math.exp %174 : vector<4x32xf32>
    %cst_43 = arith.constant 1.000000e+00 : f32
    %176 = vector.broadcast %cst_43 : f32 to vector<4x32xf32>
    %177 = arith.addf %176, %175 : vector<4x32xf32>
    %178 = arith.divf %176, %177 : vector<4x32xf32>
    %179 = vector.extract_strided_slice %166 {offsets = [0, 64], sizes = [4, 32], strides = [1, 1]} : vector<4x128xf32> to vector<4x32xf32>
    %180 = math.tanh %179 : vector<4x32xf32>
    %181 = vector.extract_strided_slice %166 {offsets = [0, 96], sizes = [4, 32], strides = [1, 1]} : vector<4x128xf32> to vector<4x32xf32>
    %182 = arith.negf %181 : vector<4x32xf32>
    %183 = math.exp %182 : vector<4x32xf32>
    %cst_44 = arith.constant 1.000000e+00 : f32
    %184 = vector.broadcast %cst_44 : f32 to vector<4x32xf32>
    %185 = arith.addf %184, %183 : vector<4x32xf32>
    %186 = arith.divf %184, %185 : vector<4x32xf32>
    %187 = arith.mulf %178, %158 : vector<4x32xf32>
    %188 = arith.mulf %172, %180 : vector<4x32xf32>
    %189 = arith.addf %187, %188 : vector<4x32xf32>
    %190 = math.tanh %189 : vector<4x32xf32>
    %191 = arith.mulf %186, %190 : vector<4x32xf32>
    %c5 = arith.constant 5 : index
    %c0_45 = arith.constant 0 : index
    %c0_46 = arith.constant 0 : index
    %192 = vector.load %arg5[%c5, %c0_45, %c0_46] : memref<8x4x32xf32, #tpu.memory_space<vmem>>, vector<1x4x32xf32>
    %193 = vector.shape_cast %192 : vector<1x4x32xf32> to vector<4x32xf32>
    %194 = vector.shape_cast %191 : vector<4x32xf32> to vector<1x4x32xf32>
    tpu.vector_store %arg5[%c5, %c0_45, %c0_46], %194 {strides = array<i32>} : memref<8x4x32xf32, #tpu.memory_space<vmem>>, vector<1x4x32xf32>,
    %195 = vector.extract_strided_slice %6 {offsets = [24, 0], sizes = [4, 128], strides = [1, 1]} : vector<32x128xf32> to vector<4x128xf32>
    %cst_47 = arith.constant dense<0.000000e+00> : vector<4x128xf32>
    %196 = tpu.matmul %191, %1, %cst_47 {dimension_numbers = #tpu.dot_dimension_numbers<[1], [0], [0], [1], [0, 0, 1, 1], [], []>} : vector<4x32xf32>, vector<32x128xf32>, vector<4x128xf32> -> vector<4x128xf32>
    %197 = arith.addf %195, %196 : vector<4x128xf32>
    %198 = vector.extract_strided_slice %197 {offsets = [0, 0], sizes = [4, 32], strides = [1, 1]} : vector<4x128xf32> to vector<4x32xf32>
    %199 = arith.negf %198 : vector<4x32xf32>
    %200 = math.exp %199 : vector<4x32xf32>
    %cst_48 = arith.constant 1.000000e+00 : f32
    %201 = vector.broadcast %cst_48 : f32 to vector<4x32xf32>
    %202 = arith.addf %201, %200 : vector<4x32xf32>
    %203 = arith.divf %201, %202 : vector<4x32xf32>
    %204 = vector.extract_strided_slice %197 {offsets = [0, 32], sizes = [4, 32], strides = [1, 1]} : vector<4x128xf32> to vector<4x32xf32>
    %205 = arith.negf %204 : vector<4x32xf32>
    %206 = math.exp %205 : vector<4x32xf32>
    %cst_49 = arith.constant 1.000000e+00 : f32
    %207 = vector.broadcast %cst_49 : f32 to vector<4x32xf32>
    %208 = arith.addf %207, %206 : vector<4x32xf32>
    %209 = arith.divf %207, %208 : vector<4x32xf32>
    %210 = vector.extract_strided_slice %197 {offsets = [0, 64], sizes = [4, 32], strides = [1, 1]} : vector<4x128xf32> to vector<4x32xf32>
    %211 = math.tanh %210 : vector<4x32xf32>
    %212 = vector.extract_strided_slice %197 {offsets = [0, 96], sizes = [4, 32], strides = [1, 1]} : vector<4x128xf32> to vector<4x32xf32>
    %213 = arith.negf %212 : vector<4x32xf32>
    %214 = math.exp %213 : vector<4x32xf32>
    %cst_50 = arith.constant 1.000000e+00 : f32
    %215 = vector.broadcast %cst_50 : f32 to vector<4x32xf32>
    %216 = arith.addf %215, %214 : vector<4x32xf32>
    %217 = arith.divf %215, %216 : vector<4x32xf32>
    %218 = arith.mulf %209, %189 : vector<4x32xf32>
    %219 = arith.mulf %203, %211 : vector<4x32xf32>
    %220 = arith.addf %218, %219 : vector<4x32xf32>
    %221 = math.tanh %220 : vector<4x32xf32>
    %222 = arith.mulf %217, %221 : vector<4x32xf32>
    %c6 = arith.constant 6 : index
    %c0_51 = arith.constant 0 : index
    %c0_52 = arith.constant 0 : index
    %223 = vector.load %arg5[%c6, %c0_51, %c0_52] : memref<8x4x32xf32, #tpu.memory_space<vmem>>, vector<1x4x32xf32>
    %224 = vector.shape_cast %223 : vector<1x4x32xf32> to vector<4x32xf32>
    %225 = vector.shape_cast %222 : vector<4x32xf32> to vector<1x4x32xf32>
    tpu.vector_store %arg5[%c6, %c0_51, %c0_52], %225 {strides = array<i32>} : memref<8x4x32xf32, #tpu.memory_space<vmem>>, vector<1x4x32xf32>,
    %226 = vector.extract_strided_slice %6 {offsets = [28, 0], sizes = [4, 128], strides = [1, 1]} : vector<32x128xf32> to vector<4x128xf32>
    %cst_53 = arith.constant dense<0.000000e+00> : vector<4x128xf32>
    %227 = tpu.matmul %222, %1, %cst_53 {dimension_numbers = #tpu.dot_dimension_numbers<[1], [0], [0], [1], [0, 0, 1, 1], [], []>} : vector<4x32xf32>, vector<32x128xf32>, vector<4x128xf32> -> vector<4x128xf32>
    %228 = arith.addf %226, %227 : vector<4x128xf32>
    %229 = vector.extract_strided_slice %228 {offsets = [0, 0], sizes = [4, 32], strides = [1, 1]} : vector<4x128xf32> to vector<4x32xf32>
    %230 = arith.negf %229 : vector<4x32xf32>
    %231 = math.exp %230 : vector<4x32xf32>
    %cst_54 = arith.constant 1.000000e+00 : f32
    %232 = vector.broadcast %cst_54 : f32 to vector<4x32xf32>
    %233 = arith.addf %232, %231 : vector<4x32xf32>
    %234 = arith.divf %232, %233 : vector<4x32xf32>
    %235 = vector.extract_strided_slice %228 {offsets = [0, 32], sizes = [4, 32], strides = [1, 1]} : vector<4x128xf32> to vector<4x32xf32>
    %236 = arith.negf %235 : vector<4x32xf32>
    %237 = math.exp %236 : vector<4x32xf32>
    %cst_55 = arith.constant 1.000000e+00 : f32
    %238 = vector.broadcast %cst_55 : f32 to vector<4x32xf32>
    %239 = arith.addf %238, %237 : vector<4x32xf32>
    %240 = arith.divf %238, %239 : vector<4x32xf32>
    %241 = vector.extract_strided_slice %228 {offsets = [0, 64], sizes = [4, 32], strides = [1, 1]} : vector<4x128xf32> to vector<4x32xf32>
    %242 = math.tanh %241 : vector<4x32xf32>
    %243 = vector.extract_strided_slice %228 {offsets = [0, 96], sizes = [4, 32], strides = [1, 1]} : vector<4x128xf32> to vector<4x32xf32>
    %244 = arith.negf %243 : vector<4x32xf32>
    %245 = math.exp %244 : vector<4x32xf32>
    %cst_56 = arith.constant 1.000000e+00 : f32
    %246 = vector.broadcast %cst_56 : f32 to vector<4x32xf32>
    %247 = arith.addf %246, %245 : vector<4x32xf32>
    %248 = arith.divf %246, %247 : vector<4x32xf32>
    %249 = arith.mulf %240, %220 : vector<4x32xf32>
    %250 = arith.mulf %234, %242 : vector<4x32xf32>
    %251 = arith.addf %249, %250 : vector<4x32xf32>
    %252 = math.tanh %251 : vector<4x32xf32>
    %253 = arith.mulf %248, %252 : vector<4x32xf32>
    %c7 = arith.constant 7 : index
    %c0_57 = arith.constant 0 : index
    %c0_58 = arith.constant 0 : index
    %254 = vector.load %arg5[%c7, %c0_57, %c0_58] : memref<8x4x32xf32, #tpu.memory_space<vmem>>, vector<1x4x32xf32>
    %255 = vector.shape_cast %254 : vector<1x4x32xf32> to vector<4x32xf32>
    %256 = vector.shape_cast %253 : vector<4x32xf32> to vector<1x4x32xf32>
    tpu.vector_store %arg5[%c7, %c0_57, %c0_58], %256 {strides = array<i32>} : memref<8x4x32xf32, #tpu.memory_space<vmem>>, vector<1x4x32xf32>,
    %c0_59 = arith.constant 0 : index
    %c0_60 = arith.constant 0 : index
    %257 = vector.load %arg6[%c0_59, %c0_60] : memref<4x32xf32, #tpu.memory_space<vmem>>, vector<4x32xf32>
    tpu.vector_store %arg6[%c0_59, %c0_60], %253 {strides = array<i32>} : memref<4x32xf32, #tpu.memory_space<vmem>>, vector<4x32xf32>,
    %c0_61 = arith.constant 0 : index
    %c0_62 = arith.constant 0 : index
    %258 = vector.load %arg7[%c0_61, %c0_62] : memref<4x32xf32, #tpu.memory_space<vmem>>, vector<4x32xf32>
    tpu.vector_store %arg7[%c0_61, %c0_62], %251 {strides = array<i32>} : memref<4x32xf32, #tpu.memory_space<vmem>>, vector<4x32xf32>,
    return
  }
}

</mosaic_0001>

<bundles_post_ra>
// kernel: encoder_forward.1
= control target key start
LH: loop header
LB: loop body
LE: loop exit
PB: predicated region body
PF: predicated region fallthrough
CT: control target
= control target key end

     0   :  { %13 = vsyncpa [#allocation3], 0  ;;  %vm42_vm0 = vcmask 130048   ;;  %v1425_v3 = vmov 0.0|0.0   ;;  %vm1426_vm1 = vmmov 0   ;;  %v1427_v10 = vmov 0.0   ;;  %s1699_s0 = inlined_call_operand.vmem [shape: f32[32,16], index: 0, kind: input, shape index: {}]   ;;  %s1700_s1 = inlined_call_operand.vmem [shape: f32[4,32], index: 1, kind: input, shape index: {}]   ;;  %s1701_s2 = inlined_call_operand.vmem [shape: f32[4,32], index: 2, kind: input, shape index: {}]   ;;  %s1702_s3 = inlined_call_operand.vmem [shape: f32[48,128], index: 3, kind: input, shape index: {}]   ;;  %s1703_s4 = inlined_call_operand.vmem [shape: f32[1,128], index: 4, kind: input, shape index: {}]   ;;  %s1704_s5 = inlined_call_operand.hbm [shape: f32[8,4,32], index: 5, kind: output, shape index: {0}]   ;;  %s1705_s6 = inlined_call_operand.hbm [shape: f32[4,32], index: 6, kind: output, shape index: {1}]   ;;  %s1706_s7 = inlined_call_operand.hbm [shape: f32[4,32], index: 7, kind: output, shape index: {2}]  }
   0x1   :  { %v25_v0 = vld [vmem:[%s1702_s3] sm:$0xff]  ;;  %v26_v1 = vld [vmem:[%s1702_s3 + $0x8] sm:$0xff]  ;;  %v27_v2 = vld [vmem:[%s1702_s3 + $0x10] sm:$0xff]  ;;  %1233 = vmatprep.subr.bf16.mxu1 %v1425_v3  ;;  %1149 = vmatprep.mubr.msk.f32.mxu1 %vm1426_vm1, %v1427_v10 }
   0x2   :  { %v1229_v4 = vpack.c.bf16 %v26_v1, %v25_v0  ;;  %v28_v5 = vld [vmem:[%s1702_s3 + $0x18] sm:$0xff]  ;;  %v32_v6 = vld [vmem:[%s1699_s0] sm:$0xff]  ;;  %v30_v9 = vld [vmem:[%s1702_s3 + $0x28] sm:$0xff] }
   0x3   :  { %v1491_v7 = vpack.c.bf16 %v28_v5, %v27_v2  ;;  %1135 = vmatprep.mubr.msk.f32.mxu0 %vm42_vm0, %v32_v6  ;;  %v29_v8 = vld [vmem:[%s1702_s3 + $0x20] sm:$0xff] }
   0x4   :  { %1230 = vmatprep.subr.bf16.mxu0 %v1229_v4 }
   0x5   :  { %14 = vsyncpa [#allocation5], 0  ;;  %1235 = vmatpush3.bf16.msra.mxu1 %v1491_v7  ;;  %1232 = vmatpush3.bf16.msra.mxu0 %v1229_v4  ;;  %v33_v11 = vld [vmem:[%s1699_s0 + $0x8] sm:$0xff]  ;;  %v1506_v12 = vpack.c.bf16 %v30_v9, %v29_v8  ;;  %v140_v13 = vld [vmem:[%s1700_s1] sm:$0xf]  ;;  %vm142_vm2 = vcmask 261120  }
   0x6   :  { %1236 = vmatprep.subr.bf16.mxu1 %v1425_v3  ;;  %1239 = vmatprep.subr.bf16.mxu0 %v1425_v3  ;;  %v1530_v14 = vld [vmem:[%s1703_s4] ss:$0 sm:$0xff]  ;;  %s1428_s19 = smov 64   ;;  %s1429_s22 = smov 32   ;;  %v34_v33 = vld [vmem:[%s1699_s0 + $0x10] sm:$0xff]  ;;  %v35_v34 = vld [vmem:[%s1699_s0 + $0x18] sm:$0xff] }
   0x7   :  { %v141_v22 = vld [vmem:[%s1701_s2] sm:$0xf]  ;;  %vm249_vm3 = vcmask 257024   ;;  %vm359_vm4 = vcmask 261124   ;;  %s1430_s0 = smov 96   ;;  %s1431_s25 = smov [#allocation4]  }
   0x8   :  { %1136 = vmatmul.mubr.msk.f32.vlgmr.msra.gmra.mrb[0].mxu0 %vm42_vm0, %v33_v11  ;;  %s1039_s26 = sshll.u32 %s1431_s25, 4  ;;  %s1432_s27 = smov [#allocation2]   ;;  %s1040_s26 = int_to_ptr.vmem [resolvable:$true] %s1039_s26 }
   0x9   :  { %1238 = vmatpush3.bf16.msra.mxu1 %v1506_v12  ;;  %1241 = vmatpush3.bf16.msra.mxu0 %v1491_v7  ;;  %s1026_s28 = sshll.u32 %s1432_s27, 4  ;;  %s1433_s29 = smov [#allocation6]   ;;  %s1644_s28 = int_to_ptr.vmem [resolvable:$true] %s1026_s28 }
   0xa   :  { %1242 = vmatprep.subr.bf16.mxu0 %v1425_v3  ;;  %1245 = vmatprep.subr.bf16.mxu1 %v1425_v3  ;;  %s1049_s30 = sshll.u32 %s1433_s29, 4  ;;  %s1355_s8 = scalar_lea.vmem %s1040_s26, 64  ;;  %s1648_s30 = int_to_ptr.vmem [resolvable:$true] %s1049_s30 }
   0xb   :  { %1138 = vmatprep.mubr.msk.f32.mxu0 %vm42_vm0, %v34_v33  ;;  %p1356_p0 = scmp.ne.s32.totalorder %s1040_s26, %s1355_s8  ;;  %p1360_p1 = scmp.lt.s32.totalorder %s1040_s26, %s1040_s26 }
   0xc   :  { %1150 = vmatmul.mubr.msk.f32.vlgmr.msra.gmra.mrb[0].mxu1 %vm142_vm2, %v140_v13  ;;  %1139 = vmatmul.mubr.msk.f32.gmra.mrb[2].mxu0 %vm42_vm0, %v35_v34  ;;  %p1361_p2 = scmp.lt.s32.totalorder %s1355_s8, %s1355_s8 }
   0xd   :  { %1244 = vmatpush3.bf16.msra.mxu0 %v1506_v12  ;;  %1247 = vmatpush3.bf16.msra.mxu1 %v1491_v7 }
   0xe   :  { %1248 = vmatprep.subr.bf16.mxu1 %v1425_v3  ;;  %1171 = vmatprep.mubr.msk.f32.mxu1 %vm1426_vm1, %v1427_v10  ;;  %p1362_p3 = por %p1361_p2, %p1360_p1 }
   0xf   :  { %1251 = vmatprep.subr.bf16.mxu0 %v1425_v3  ;;  %1160 = vmatprep.mubr.msk.f32.mxu0 %vm1426_vm1, %v1427_v10 }
  0x10   :  { %p1363_p4 = pnand %p1362_p3, %p1356_p0 }
  0x11   :  { %1250 = vmatpush3.bf16.msra.mxu1 %v1506_v12 }
  0x12   :  { %1257 = vmatprep.subr.bf16.mxu1 %v1425_v3 }
  0xdb   :  { %v1532_v15 = vpop.f32.mrb[0].mxu0 }
  0xdc   :  { %v121_v16 = vpop.f32.mrb[1].mxu0  ;;  %v127_v61 = vadd.f32 %v1532_v15, %v1530_v14 }
  0xdd   :  { %v122_v17 = vadd.f32 %v1530_v14, %v121_v16 }
  0xdf   :  { %v212_v18 = vpop.f32.mrb[0].mxu1  ;;  %v1553_v38 = vpop.f32.mrb[2].mxu0 }
  0xe0   :  { %v216_v19 = vadd.f32 %v212_v18, %v122_v17  ;;  %v1151_v20 = vpop.f32.mrb[1].mxu1  ;;  %v1555_v39 = vpop.f32.mrb[3].mxu0 }
  0xe2   :  { %1291 = vtanh.f32 %v216_v19  ;;  %v1070_v23 = vmul.f32 -1.442695, %v216_v19 }
  0xe4   :  { %1293 = vpow2.f32 %v1070_v23 }
  0xec   :  { %v1292_v21 = vpop.eup %1291 }
  0xed   :  { %230 = vrot.lane.b32.xlu0 %v1292_v21, %s1428_s19 }
  0xee   :  { %v1294_v24 = vpop.eup %1293 }
  0xef   :  { %v220_v25 = vadd.f32 1.0, %v1294_v24 }
  0xf1   :  { %225 = vrot.lane.b32.xlu0 %v141_v22, %s1429_s22  ;;  %1295 = vrcp.f32 %v220_v25 }
  0xfb   :  { %v1296_v26 = vpop.eup %1295 }
 0x15f   :  { %v231_v27 = vpop.permute.xlu0 %230 }
 0x160   :  { %v233_v28 = vmul.f32 %v1296_v26, %v231_v27 }
 0x162   :  { %235 = vrot.lane.b32.xlu1 %v233_v28, %s1429_s22 }
 0x163   :  { %v226_v29 = vpop.permute.xlu0 %225 }
 0x164   :  { %v228_v30 = vmul.f32 %v1296_v26, %v226_v29 }
 0x1d4   :  { %v236_v31 = vpop.permute.xlu1 %235 }
 0x1d5   :  { %v238_v32 = vadd.f32 %v236_v31, %v228_v30 }
 0x1d7   :  { %1297 = vtanh.f32 %v238_v32  ;;  %v335_v52 = vrot.slane %v238_v32, 4 }
 0x1e1   :  { %v1298_v35 = vpop.eup %1297 }
 0x1e2   :  { %241 = vrot.lane.b32.xlu1 %v1298_v35, %s1428_s19 }
 0x254   :  { %v242_v36 = vpop.permute.xlu1 %241 }
 0x255   :  { %v244_v37 = vmul.f32 %v1296_v26, %v242_v36 }
 0x257   :  { %246 = vrot.lane.b32.xlu0 %v244_v37, %s1429_s22 }
 0x2c9   :  { %v247_v40 = vpop.permute.xlu0 %246 }
 0x2ca   :  { %250 = vst.msk [vmem:[#allocation2] sm:$0xf] %vm249_vm3, %v247_v40  ;;  %1161 = vmatmul.mubr.msk.f32.vlgmr.msra.gmra.mrb[4].mxu0 %vm142_vm2, %v247_v40 }
 0x2cb   :  { %1253 = vmatpush3.bf16.msra.mxu0 %v1491_v7  ;;  %1182 = vmatprep.mubr.msk.f32.mxu0 %vm1426_vm1, %v1427_v10 }
 0x2cc   :  { %1254 = vmatprep.subr.bf16.mxu0 %v1425_v3 }
 0x2cf   :  { %1256 = vmatpush3.bf16.msra.mxu0 %v1506_v12 }
 0x2d0   :  { %1263 = vmatprep.subr.bf16.mxu0 %v1425_v3 }
 0x39d   :  { %v319_v41 = vpop.f32.mrb[4].mxu0 }
 0x39e   :  { %v324_v42 = vrot.slane %v319_v41, 4  ;;  %v1162_v43 = vpop.f32.mrb[5].mxu0 }
 0x39f   :  { %v132_v43 = vadd.f32 %v1530_v14, %v1555_v39 }
 0x3a0   :  { %v326_v44 = vadd.f32 %v324_v42, %v122_v17 }
 0x3a2   :  { %1299 = vtanh.f32 %v326_v44  ;;  %v1072_v46 = vmul.f32 -1.442695, %v326_v44 }
 0x3a4   :  { %1301 = vpow2.f32 %v1072_v46 }
 0x3ac   :  { %v1300_v45 = vpop.eup %1299 }
 0x3ad   :  { %339 = vrot.lane.b32.xlu1 %v1300_v45, %s1428_s19 }
 0x3ae   :  { %v1302_v47 = vpop.eup %1301 }
 0x3af   :  { %v330_v48 = vadd.f32 1.0, %v1302_v47 }
 0x3b1   :  { %1303 = vrcp.f32 %v330_v48 }
 0x3bb   :  { %v1304_v49 = vpop.eup %1303 }
 0x3bc   :  { %v337_v53 = vmul.f32 %v1304_v49, %v335_v52 }
 0x41f   :  { %v340_v50 = vpop.permute.xlu1 %339 }
 0x420   :  { %v342_v51 = vmul.f32 %v1304_v49, %v340_v50 }
 0x422   :  { %344 = vrot.lane.b32.xlu0 %v342_v51, %s1429_s22 }
 0x494   :  { %v345_v54 = vpop.permute.xlu0 %344 }
 0x495   :  { %v347_v55 = vadd.f32 %v345_v54, %v337_v53 }
 0x497   :  { %1305 = vtanh.f32 %v347_v55  ;;  %v445_v11 = vrot.slane %v347_v55, 4 }
 0x4a1   :  { %v1306_v56 = vpop.eup %1305 }
 0x4a2   :  { %350 = vrot.lane.b32.xlu1 %v1306_v56, %s1428_s19 }
 0x514   :  { %v351_v57 = vpop.permute.xlu1 %350 }
 0x515   :  { %v1568_v58 = vmul.f32 %v1304_v49, %v351_v57 }
 0x517   :  { %v361_v59 = vrot.slane %v1568_v58, 4 }
 0x519   :  { %362 = vrot.lane.b32.xlu0 %v361_v59, %s1429_s22 }
 0x58b   :  { %v363_v60 = vpop.permute.xlu0 %362 }
 0x58c   :  { %1172 = vmatmul.mubr.msk.f32.vlgmr.msra.gmra.mrb[2].mxu1 %vm142_vm2, %v363_v60 }
 0x58d   :  { %1259 = vmatpush3.bf16.msra.mxu1 %v1491_v7  ;;  %1193 = vmatprep.mubr.msk.f32.mxu1 %vm1426_vm1, %v1427_v10 }
 0x58e   :  { %1260 = vmatprep.subr.bf16.mxu1 %v1425_v3 }
 0x591   :  { %1262 = vmatpush3.bf16.msra.mxu1 %v1506_v12 }
 0x592   :  { %1269 = vmatprep.subr.bf16.mxu1 %v1425_v3 }
 0x65f   :  { %v432_v62 = vpop.f32.mrb[2].mxu1 }
 0x660   :  { %v436_v63 = vadd.f32 %v432_v62, %v127_v61  ;;  %v1173_v0 = vpop.f32.mrb[3].mxu1 }
 0x662   :  { %1307 = vtanh.f32 %v436_v63  ;;  %v1074_v2 = vmul.f32 -1.442695, %v436_v63 }
 0x664   :  { %1309 = vpow2.f32 %v1074_v2 }
 0x66c   :  { %v1308_v1 = vpop.eup %1307 }
 0x66d   :  { %449 = vrot.lane.b32.xlu1 %v1308_v1, %s1428_s19 }
 0x66e   :  { %v1310_v4 = vpop.eup %1309 }
 0x66f   :  { %v440_v5 = vadd.f32 1.0, %v1310_v4 }
 0x671   :  { %1311 = vrcp.f32 %v440_v5 }
 0x67b   :  { %v1312_v6 = vpop.eup %1311 }
 0x67c   :  { %v447_v13 = vmul.f32 %v1312_v6, %v445_v11 }
 0x6df   :  { %v450_v8 = vpop.permute.xlu1 %449 }
 0x6e0   :  { %v452_v9 = vmul.f32 %v1312_v6, %v450_v8 }
 0x6e2   :  { %454 = vrot.lane.b32.xlu0 %v452_v9, %s1429_s22 }
 0x754   :  { %v455_v15 = vpop.permute.xlu0 %454 }
 0x755   :  { %v457_v16 = vadd.f32 %v455_v15, %v447_v13 }
 0x757   :  { %1313 = vtanh.f32 %v457_v16  ;;  %v554_v32 = vrot.slane %v457_v16, 4 }
 0x761   :  { %v1314_v17 = vpop.eup %1313 }
 0x762   :  { %460 = vrot.lane.b32.xlu1 %v1314_v17, %s1428_s19 }
 0x7d4   :  { %v461_v18 = vpop.permute.xlu1 %460 }
 0x7d5   :  { %v463_v19 = vmul.f32 %v1312_v6, %v461_v18 }
 0x7d7   :  { %465 = vrot.lane.b32.xlu0 %v463_v19, %s1429_s22  ;;  %v137_v19 = vadd.f32 %v1553_v38, %v1530_v14 }
 0x849   :  { %v466_v20 = vpop.permute.xlu0 %465 }
 0x84a   :  { %469 = vst.msk [vmem:[#allocation2 + $0x8] sm:$0xf] %vm249_vm3, %v466_v20  ;;  %1183 = vmatmul.mubr.msk.f32.vlgmr.msra.gmra.mrb[6].mxu0 %vm142_vm2, %v466_v20 }
 0x84b   :  { %1265 = vmatpush3.bf16.msra.mxu0 %v1491_v7  ;;  %1204 = vmatprep.mubr.msk.f32.mxu0 %vm1426_vm1, %v1427_v10 }
 0x84c   :  { %1266 = vmatprep.subr.bf16.mxu0 %v1425_v3 }
 0x84f   :  { %1268 = vmatpush3.bf16.msra.mxu0 %v1506_v12 }
 0x850   :  { %1275 = vmatprep.subr.bf16.mxu0 %v1425_v3 }
 0x91d   :  { %v538_v21 = vpop.f32.mrb[6].mxu0 }
 0x91e   :  { %v543_v22 = vrot.slane %v538_v21, 4  ;;  %v1184_v23 = vpop.f32.mrb[7].mxu0 }
 0x920   :  { %v545_v24 = vadd.f32 %v543_v22, %v127_v61 }
 0x922   :  { %1315 = vtanh.f32 %v545_v24  ;;  %v1076_v26 = vmul.f32 -1.442695, %v545_v24 }
 0x924   :  { %1317 = vpow2.f32 %v1076_v26 }
 0x92c   :  { %v1316_v25 = vpop.eup %1315 }
 0x92d   :  { %558 = vrot.lane.b32.xlu1 %v1316_v25, %s1428_s19 }
 0x92e   :  { %v1318_v27 = vpop.eup %1317 }
 0x92f   :  { %v549_v28 = vadd.f32 1.0, %v1318_v27 }
 0x931   :  { %1319 = vrcp.f32 %v549_v28 }
 0x93b   :  { %v1320_v29 = vpop.eup %1319 }
 0x93c   :  { %v556_v33 = vmul.f32 %v1320_v29, %v554_v32 }
 0x99f   :  { %v559_v30 = vpop.permute.xlu1 %558 }
 0x9a0   :  { %v561_v31 = vmul.f32 %v1320_v29, %v559_v30 }
 0x9a2   :  { %563 = vrot.lane.b32.xlu0 %v561_v31, %s1429_s22 }
 0xa14   :  { %v564_v34 = vpop.permute.xlu0 %563 }
 0xa15   :  { %v566_v35 = vadd.f32 %v564_v34, %v556_v33 }
 0xa17   :  { %1321 = vtanh.f32 %v566_v35  ;;  %v663_v54 = vrot.slane %v566_v35, 4 }
 0xa21   :  { %v1322_v36 = vpop.eup %1321 }
 0xa22   :  { %569 = vrot.lane.b32.xlu1 %v1322_v36, %s1428_s19 }
 0xa94   :  { %v570_v37 = vpop.permute.xlu1 %569 }
 0xa95   :  { %v1596_v40 = vmul.f32 %v1320_v29, %v570_v37 }
 0xa97   :  { %v579_v41 = vrot.slane %v1596_v40, 4 }
 0xa99   :  { %580 = vrot.lane.b32.xlu0 %v579_v41, %s1429_s22 }
 0xb0b   :  { %v581_v42 = vpop.permute.xlu0 %580 }
 0xb0c   :  { %1194 = vmatmul.mubr.msk.f32.vlgmr.msra.gmra.mrb[4].mxu1 %vm142_vm2, %v581_v42 }
 0xb0d   :  { %1271 = vmatpush3.bf16.msra.mxu1 %v1491_v7  ;;  %1215 = vmatprep.mubr.msk.f32.mxu1 %vm1426_vm1, %v1427_v10 }
 0xb0e   :  { %1272 = vmatprep.subr.bf16.mxu1 %v1425_v3 }
 0xb11   :  { %1274 = vmatpush3.bf16.msra.mxu1 %v1506_v12 }
 0xbdf   :  { %v650_v44 = vpop.f32.mrb[4].mxu1 }
 0xbe0   :  { %v654_v45 = vadd.f32 %v650_v44, %v132_v43  ;;  %v1195_v46 = vpop.f32.mrb[5].mxu1 }
 0xbe2   :  { %1323 = vtanh.f32 %v654_v45  ;;  %v1078_v48 = vmul.f32 -1.442695, %v654_v45 }
 0xbe4   :  { %1325 = vpow2.f32 %v1078_v48 }
 0xbec   :  { %v1324_v47 = vpop.eup %1323 }
 0xbed   :  { %667 = vrot.lane.b32.xlu1 %v1324_v47, %s1428_s19 }
 0xbee   :  { %v1326_v49 = vpop.eup %1325 }
 0xbef   :  { %v658_v50 = vadd.f32 1.0, %v1326_v49 }
 0xbf1   :  { %1327 = vrcp.f32 %v658_v50 }
 0xbfb   :  { %v1328_v51 = vpop.eup %1327 }
 0xbfc   :  { %v665_v55 = vmul.f32 %v1328_v51, %v663_v54 }
 0xc5f   :  { %v668_v52 = vpop.permute.xlu1 %667 }
 0xc60   :  { %v670_v53 = vmul.f32 %v1328_v51, %v668_v52 }
 0xc62   :  { %672 = vrot.lane.b32.xlu0 %v670_v53, %s1429_s22 }
 0xcd4   :  { %v673_v39 = vpop.permute.xlu0 %672 }
 0xcd5   :  { %v675_v56 = vadd.f32 %v673_v39, %v665_v55 }
 0xcd7   :  { %1329 = vtanh.f32 %v675_v56 }
 0xce1   :  { %v1330_v57 = vpop.eup %1329 }
 0xce2   :  { %678 = vrot.lane.b32.xlu1 %v1330_v57, %s1428_s19 }
 0xd54   :  { %v679_v59 = vpop.permute.xlu1 %678 }
 0xd55   :  { %v681_v60 = vmul.f32 %v1328_v51, %v679_v59 }
 0xd57   :  { %683 = vrot.lane.b32.xlu0 %v681_v60, %s1429_s22 }
 0xdc9   :  { %v684_v61 = vpop.permute.xlu0 %683 }
 0xdca   :  { %687 = vst.msk [vmem:[#allocation2 + $0x10] sm:$0xf] %vm249_vm3, %v684_v61  ;;  %1205 = vmatmul.mubr.msk.f32.vlgmr.msra.gmra.mrb[8].mxu0 %vm142_vm2, %v684_v61 }
 0xdcb   :  { %1277 = vmatpush3.bf16.msra.mxu0 %v1491_v7  ;;  %1226 = vmatprep.mubr.msk.f32.mxu0 %vm1426_vm1, %v1427_v10 }
 0xdcc   :  { %1278 = vmatprep.subr.bf16.mxu0 %v1425_v3  ;;  %v772_v3 = vrot.slane %v675_v56, 4 }
 0xdcf   :  { %1280 = vmatpush3.bf16.msra.mxu0 %v1506_v12 }
 0xe9d   :  { %v756_v62 = vpop.f32.mrb[8].mxu0 }
 0xe9e   :  { %v761_v63 = vrot.slane %v756_v62, 4  ;;  %v1206_v0 = vpop.f32.mrb[9].mxu0 }
 0xea0   :  { %v763_v1 = vadd.f32 %v761_v63, %v132_v43 }
 0xea2   :  { %1331 = vtanh.f32 %v763_v1  ;;  %v1080_v4 = vmul.f32 -1.442695, %v763_v1 }
 0xea4   :  { %1333 = vpow2.f32 %v1080_v4 }
 0xeac   :  { %v1332_v2 = vpop.eup %1331 }
 0xead   :  { %776 = vrot.lane.b32.xlu1 %v1332_v2, %s1428_s19 }
 0xeae   :  { %v1334_v5 = vpop.eup %1333 }
 0xeaf   :  { %v767_v6 = vadd.f32 1.0, %v1334_v5 }
 0xeb1   :  { %1335 = vrcp.f32 %v767_v6 }
 0xebb   :  { %v1336_v7 = vpop.eup %1335 }
 0xebc   :  { %v774_v12 = vmul.f32 %v1336_v7, %v772_v3 }
 0xf1f   :  { %v777_v8 = vpop.permute.xlu1 %776 }
 0xf20   :  { %v779_v10 = vmul.f32 %v1336_v7, %v777_v8 }
 0xf22   :  { %781 = vrot.lane.b32.xlu0 %v779_v10, %s1429_s22 }
 0xf94   :  { %v782_v9 = vpop.permute.xlu0 %781 }
 0xf95   :  { %v784_v11 = vadd.f32 %v782_v9, %v774_v12 }
 0xf97   :  { %1337 = vtanh.f32 %v784_v11  ;;  %v881_v30 = vrot.slane %v784_v11, 4 }
 0xfa1   :  { %v1338_v13 = vpop.eup %1337 }
 0xfa2   :  { %787 = vrot.lane.b32.xlu1 %v1338_v13, %s1428_s19 }
0x1014   :  { %v788_v15 = vpop.permute.xlu1 %787 }
0x1015   :  { %v790_v16 = vmul.f32 %v1336_v7, %v788_v15 }
0x1017   :  { %v797_v17 = vrot.slane %v790_v16, 4 }
0x1019   :  { %798 = vrot.lane.b32.xlu0 %v797_v17, %s1429_s22 }
0x108b   :  { %v799_v18 = vpop.permute.xlu0 %798 }
0x108c   :  { %1216 = vmatmul.mubr.msk.f32.vlgmr.msra.gmra.mrb[6].mxu1 %vm142_vm2, %v799_v18 }
0x115f   :  { %v868_v20 = vpop.f32.mrb[6].mxu1 }
0x1160   :  { %v872_v21 = vadd.f32 %v868_v20, %v137_v19  ;;  %v1217_v22 = vpop.f32.mrb[7].mxu1 }
0x1162   :  { %1339 = vtanh.f32 %v872_v21  ;;  %v1082_v24 = vmul.f32 -1.442695, %v872_v21 }
0x1164   :  { %1341 = vpow2.f32 %v1082_v24 }
0x116c   :  { %v1340_v23 = vpop.eup %1339 }
0x116d   :  { %885 = vrot.lane.b32.xlu1 %v1340_v23, %s1428_s19 }
0x116e   :  { %v1342_v25 = vpop.eup %1341 }
0x116f   :  { %v876_v26 = vadd.f32 1.0, %v1342_v25 }
0x1171   :  { %1343 = vrcp.f32 %v876_v26 }
0x117b   :  { %v1344_v27 = vpop.eup %1343 }
0x117c   :  { %v883_v31 = vmul.f32 %v1344_v27, %v881_v30 }
0x11df   :  { %v886_v28 = vpop.permute.xlu1 %885 }
0x11e0   :  { %v888_v29 = vmul.f32 %v1344_v27, %v886_v28 }
0x11e2   :  { %890 = vrot.lane.b32.xlu0 %v888_v29, %s1429_s22 }
0x1254   :  { %v891_v14 = vpop.permute.xlu0 %890 }
0x1255   :  { %v893_v38 = vadd.f32 %v891_v14, %v883_v31 }
0x1257   :  { %1345 = vtanh.f32 %v893_v38  ;;  %v990_v50 = vrot.slane %v893_v38, 4 }
0x1261   :  { %v1346_v32 = vpop.eup %1345 }
0x1262   :  { %896 = vrot.lane.b32.xlu1 %v1346_v32, %s1428_s19 }
0x12d4   :  { %v897_v33 = vpop.permute.xlu1 %896 }
0x12d5   :  { %v899_v34 = vmul.f32 %v1344_v27, %v897_v33 }
0x12d7   :  { %901 = vrot.lane.b32.xlu0 %v899_v34, %s1429_s22 }
0x1349   :  { %v902_v35 = vpop.permute.xlu0 %901 }
0x134a   :  { %905 = vst.msk [vmem:[#allocation2 + $0x18] sm:$0xf] %vm249_vm3, %v902_v35  ;;  %1227 = vmatmul.mubr.msk.f32.vlgmr.msra.gmra.mrb[10].mxu0 %vm142_vm2, %v902_v35 }
0x141d   :  { %v974_v36 = vpop.f32.mrb[10].mxu0 }
0x141e   :  { %v979_v37 = vrot.slane %v974_v36, 4  ;;  %v1228_v41 = vpop.f32.mrb[11].mxu0 }
0x1420   :  { %v981_v42 = vadd.f32 %v979_v37, %v137_v19 }
0x1422   :  { %1347 = vtanh.f32 %v981_v42  ;;  %v1084_v44 = vmul.f32 -1.442695, %v981_v42 }
0x1424   :  { %1349 = vpow2.f32 %v1084_v44 }
0x142c   :  { %v1348_v43 = vpop.eup %1347 }
0x142d   :  { %994 = vrot.lane.b32.xlu1 %v1348_v43, %s1428_s19 }
0x142e   :  { %v1350_v45 = vpop.eup %1349 }
0x142f   :  { %v985_v46 = vadd.f32 1.0, %v1350_v45 }
0x1431   :  { %1351 = vrcp.f32 %v985_v46 }
0x143b   :  { %v1352_v47 = vpop.eup %1351 }
0x143c   :  { %v992_v51 = vmul.f32 %v1352_v47, %v990_v50 }
0x149f   :  { %v995_v48 = vpop.permute.xlu1 %994 }
0x14a0   :  { %v997_v49 = vmul.f32 %v1352_v47, %v995_v48 }
0x14a2   :  { %999 = vrot.lane.b32.xlu0 %v997_v49, %s1429_s22 }
0x14a6   :  { %574 = vrot.lane.b32.xlu0 %v1596_v40, %s1429_s22 }
0x1514   :  { %v1000_v52 = vpop.permute.xlu0 %999 }
0x1515   :  { %v1002_v53 = vadd.f32 %v1000_v52, %v992_v51 }
0x1517   :  { %1353 = vtanh.f32 %v1002_v53 }
0x1518   :  { %v575_v54 = vpop.permute.xlu0 %574 }
0x1519   :  { %578 = vst.msk [vmem:[#allocation2 + $0x8] sm:$0xf0] %vm359_vm4, %v575_v54 }
0x1521   :  { %v1354_v55 = vpop.eup %1353 }
0x1522   :  { %1005 = vrot.lane.b32.xlu1 %v1354_v55, %s1428_s19 }
0x1526   :  { %355 = vrot.lane.b32.xlu1 %v1568_v58, %s1429_s22 }
0x152a   :  { %792 = vrot.lane.b32.xlu1 %v790_v16, %s1429_s22 }
0x1594   :  { %v1006_v39 = vpop.permute.xlu1 %1005 }
0x1595   :  { %v1008_v56 = vmul.f32 %v1352_v47, %v1006_v39 }
0x1597   :  { %1010 = vrot.lane.b32.xlu0 %v1008_v56, %s1429_s22 }
0x1598   :  { %v356_v40 = vpop.permute.xlu1 %355 }
0x1599   :  { %360 = vst.msk [vmem:[#allocation2] sm:$0xf0] %vm359_vm4, %v356_v40 }
0x159b   :  { %1017 = vrot.lane.b32.xlu0 %v1002_v53, %s1430_s0 }
0x159c   :  { %v793_v57 = vpop.permute.xlu1 %792 }
0x159d   :  { %796 = vst.msk [vmem:[#allocation2 + $0x10] sm:$0xf0] %vm359_vm4, %v793_v57 }
0x1609   :  { %v1011_v58 = vpop.permute.xlu0 %1010 }
0x160a   :  { %1014 = vst.msk [vmem:[#allocation2 + $0x18] sm:$0xf0] %vm359_vm4, %v1011_v58  ;;  %1015 = vst.msk [vmem:[#allocation4 - $0x4] sm:$0xf0] %vm359_vm4, %v1011_v58 }
0x160b   :  { %1366 = shalt.err (!%p1363_p4)
}
0x160c   :  { %s1367_s11 = scalar_lea.hbm %s1705_s6, 64 }
0x160d   :  { %p1368_p5 = scmp.ne.s32.totalorder %s1705_s6, %s1367_s11  ;;  %p1371_p6 = scmp.lt.u32.totalorder %s1367_s11, %s1705_s6 }
0x160f   :  { %p1373_p7 = pnand %p1371_p6, %p1368_p5 }
0x1611   :  { %1376 = shalt.err (!%p1373_p7)
}
0x1612   :  { %1042 = dma.vmem_to_hbm [thread:$0]  %s1040_s26, 64, %s1705_s6, [#allocation5]  }
0x1613   :  { %s1377_s17 = scalar_lea.vmem %s1644_s28, 512  ;;  %p1382_p9 = scmp.lt.s32.totalorder %s1644_s28, %s1644_s28 }
0x1614   :  { %p1378_p8 = scmp.ne.s32.totalorder %s1644_s28, %s1377_s17  ;;  %p1383_p10 = scmp.lt.s32.totalorder %s1377_s17, %s1377_s17 }
0x1616   :  { %p1384_p11 = por %p1383_p10, %p1382_p9 }
0x1618   :  { %p1385_p12 = pnand %p1384_p11, %p1378_p8 }
0x161a   :  { %1388 = shalt.err (!%p1385_p12)
}
0x161b   :  { %s1389_s20 = scalar_lea.hbm %s1704_s5, 512 }
0x161c   :  { %p1390_p13 = scmp.ne.s32.totalorder %s1704_s5, %s1389_s20  ;;  %p1393_p0 = scmp.lt.u32.totalorder %s1389_s20, %s1704_s5 }
0x161e   :  { %p1395_p1 = pnand %p1393_p0, %p1390_p13 }
0x1620   :  { %1398 = shalt.err (!%p1395_p1)
}
0x1621   :  { %s1434_s6 = smov 4   ;;  %v1018_v59 = vpop.permute.xlu0 %1017  ;;  %s1399_s0 = scalar_lea.vmem %s1648_s30, 64 }
0x1622   :  { %1032 = dma.vmem_to_hbm [thread:$0]  %s1644_s28, 512, %s1704_s5, [#allocation3], %s1428_s19, %s1428_s19, %s1434_s6   ;;  %1020 = vst.msk [vmem:[#allocation6 - $0x4] sm:$0xf0] %vm359_vm4, %v1018_v59 }
0x1623   :  { %p1400_p2 = scmp.ne.s32.totalorder %s1648_s30, %s1399_s0  ;;  %p1404_p3 = scmp.lt.s32.totalorder %s1648_s30, %s1648_s30 }
0x1624   :  { %p1405_p4 = scmp.lt.s32.totalorder %s1399_s0, %s1399_s0 }
0x1626   :  { %p1406_p5 = por %p1405_p4, %p1404_p3 }
0x1628   :  { %p1407_p6 = pnand %p1406_p5, %p1400_p2 }
0x162a   :  { %1410 = shalt.err (!%p1407_p6)
}
0x162b   :  { %s1411_s27 = scalar_lea.hbm %s1706_s7, 64 }
0x162c   :  { %p1412_p7 = scmp.ne.s32.totalorder %s1706_s7, %s1411_s27  ;;  %p1415_p8 = scmp.lt.u32.totalorder %s1411_s27, %s1706_s7 }
0x162e   :  { %p1417_p9 = pnand %p1415_p8, %p1412_p7 }
0x1630   :  { %1420 = shalt.err (!%p1417_p9)
}
0x1631   :  { %1052 = dma.vmem_to_hbm [thread:$0]  %s1648_s30, 64, %s1706_s7, [#allocation5]  }
0x1632   :  { %1421 = dma.done.wait [#allocation3], 512  }
0x1633   :  { %1422 = vsyncadd [#allocation3], 4294966784 }
0x1634   :  { %1423 = dma.done.wait [#allocation5], 128  }
0x1635   :  { %1424 = vsyncadd [#allocation5], 4294967168 }
0x1636   :  { %1062 = vsyncpa [#allocation3], 1 }
0x1637   :  { %1063 = vsyncpa [#allocation5], 1 }

</bundles_post_ra>
